<compile_context>
chip_gen: v7x
topology: tpu7x:2x2x1
jax: 0.10.0
libtpu: 0.0.40
codegen_flags: <defaults>
</compile_context>

<pallas_src>
import jax
import jax.numpy as jnp
from jax import lax
from jax.experimental import pallas as pl
from jax.experimental.pallas import tpu as pltpu
import numpy as np


def _round_up(x, m):
    return (x + m - 1) // m * m


def _row_grid(n, max_rows=512):
    # 512-row tiles: larger blocks amortize the ~0.35 us/grid-step overhead on
    # v5e/v6e; at these widths a tile is still well under a MiB, so safe on v7x.
    tm = min(max_rows, _round_up(n, 8))
    return tm, _round_up(n, tm)


# ------------------------------ Pallas kernels ------------------------------

def _embed_gates_kernel(ids_ref, tab_ref, out_ref):
    # ids_ref: (tm, 1) int32 token ids, row r = t*Bp + b (time-major).
    # tab_ref: (V, 2*Gp) bf16 = [emb @ W_ih_f^T + b_f | emb @ W_ih_b^T + b_b]
    #          gate order [i, f, o, g]; biases already folded in.
    # out_ref: (2, tm, Gp) bf16 direction-major gate-space inputs.
    # Gather implemented as a one-hot matmul on the MXU (valid ids assumed).
    n = ids_ref.shape[0]
    v = tab_ref.shape[0]
    gp = out_ref.shape[-1]
    col = lax.broadcasted_iota(jnp.int32, (n, v), 1)
    onehot = (col == ids_ref[...]).astype(jnp.bfloat16)
    rows = jnp.dot(onehot, tab_ref[...], preferred_element_type=jnp.float32)
    out_ref[0] = rows[:, :gp].astype(jnp.bfloat16)
    out_ref[1] = rows[:, gp:].astype(jnp.bfloat16)


def _bilstm_dir_kernel(gx_ref, len_ref, whh_ref, out_ref, hn_ref, cn_ref,
                       h_sc, c_sc):
    # One LSTM direction per grid step (grid=(2,), "parallel": the two
    # directions go to the two TensorCores on v7x).
    # gx_ref : (T, Bp, Gp) bf16  precomputed x@W_ih + (b_ih + b_hh), [i,f,o,g]
    # len_ref: (Bp, 1)   int32   sequence lengths (packed-sequence masking)
    # whh_ref: (H, Gp)   bf16    recurrent weights, transposed, [i,f,o,g]
    # out_ref: (T, Bp, H) f32    this direction's hidden states (0 past length)
    # hn_ref, cn_ref: (Bp, H) f32 final h/c for this direction
    # h_sc, c_sc: (Bp, H) f32 scratch state (state stays f32; only the MXU
    #                          operands are bf16)
    d = pl.program_id(0)
    T, Bp, H = out_ref.shape

    h_sc[...] = jnp.zeros_like(h_sc)
    c_sc[...] = jnp.zeros_like(c_sc)

    lens = len_ref[...]                       # (Bp, 1)
    # (H, Gp) bf16 is only ~8 KiB at H=32 (a few vregs), so hoisting it across
    # the recurrence cannot spill the 64-vreg file.
    whh = whh_ref[...]

    def body(t, carry):
        # fwd (d == 0) walks t ascending; bwd (d == 1) walks t descending.
        t_eff = jnp.where(d == 0, t, T - 1 - t)
        gx_t = gx_ref[t_eff].astype(jnp.float32)            # only this direction
        gates = gx_t + jnp.dot(h_sc[...].astype(jnp.bfloat16), whh,
                               preferred_element_type=jnp.float32)
        # gate packing [i, f, o | g]: one sigmoid over 3H lanes, one tanh over H.
        sig = jax.nn.sigmoid(gates[:, 0:3 * H])
        g = jnp.tanh(gates[:, 3 * H:4 * H])
        i = sig[:, 0:H]
        f = sig[:, H:2 * H]
        o = sig[:, 2 * H:3 * H]
        c_new = f * c_sc[...] + i * g
        h_new = o * jnp.tanh(c_new)
        valid = lens > t_eff                                # freeze past seq_len
        h_sc[...] = jnp.where(valid, h_new, h_sc[...])
        c_sc[...] = jnp.where(valid, c_new, c_sc[...])
        out_ref[t_eff] = jnp.where(valid, h_new, 0.0)       # pad_packed zero-fill
        return carry

    lax.fori_loop(0, T, body, 0, unroll=2)

    hn_ref[...] = h_sc[...]
    cn_ref[...] = c_sc[...]


def _matmul_rows_kernel(x_ref, w_ref, out_ref):
    # x: (tm, 2H) f32; w: (2H, Fp) = W^T zero-padded to 128 output lanes so the
    # stores are dense (unmasked) vst; the wrapper slices back to 2H.
    out_ref[...] = jnp.dot(x_ref[...], w_ref[...],
                           preferred_element_type=jnp.float32)


# ------------------------------ JAX wrapper ----------------------------------

def init_params(key, vocab, emb_dim, hid):
    ks = jax.random.split(key, 10)
    s = 1.0 / float(np.sqrt(hid))

    def u(k, shape):
        return jax.random.uniform(k, shape, jnp.float32, -s, s)

    return dict(
        emb=jax.random.normal(ks[0], (vocab, emb_dim), jnp.float32),
        w_ih_f=u(ks[1], (4 * hid, emb_dim)),
        w_hh_f=u(ks[2], (4 * hid, hid)),
        b_ih_f=u(ks[3], (4 * hid,)),
        b_hh_f=u(ks[4], (4 * hid,)),
        w_ih_b=u(ks[5], (4 * hid, emb_dim)),
        w_hh_b=u(ks[6], (4 * hid, hid)),
        b_ih_b=u(ks[7], (4 * hid,)),
        b_hh_b=u(ks[8], (4 * hid,)),
        w_t=u(ks[9], (2 * hid, 2 * hid)),
    )


def encoder_forward(seq, seq_len, p, *, t_out=None):
    """seq: (B, T) int32; seq_len: (B,) int32.
    Returns (outputs (B, t_out, 2H), feature (B*t_out, 2H), (h_n, c_n))."""
    B, T = seq.shape
    V, E = p["emb"].shape
    H = p["w_hh_f"].shape[1]
    Bp = _round_up(B, 8)                 # sublane-pad batch
    Gp = _round_up(4 * H, 128)           # pad the WHOLE 4H gate block once
    Fp = _round_up(2 * H, 128)           # lane-padded Linear output

    if t_out is None:
        # pad_packed_sequence output length = max(seq_len); computed host-side
        # once (PyTorch also requires CPU lengths). Pass t_out statically when
        # calling under jax.jit.
        t_out = int(np.asarray(seq_len).max())
        # nn.Embedding raises on out-of-range ids; the one-hot gather would
        # silently return zeros, so validate on the same host path.
        seq_h = np.asarray(seq)
        assert seq_h.min() >= 0 and seq_h.max() < V, "token id out of range"

    # ---------------- parameter prep (time-invariant, wrapper side) ----------
    def reorder(w):                      # rows [i,f,g,o] (PyTorch) -> [i,f,o,g]
        return jnp.concatenate([w[:2 * H], w[3 * H:4 * H], w[2 * H:3 * H]], axis=0)

    def gate_table(w_ih, b_ih, b_hh):    # (V, Gp): emb @ W_ih^T with bias folded
        t = p["emb"] @ reorder(w_ih).T + reorder(b_ih + b_hh)
        return jnp.pad(t, ((0, 0), (0, Gp - 4 * H)))

    gate_tab = jnp.concatenate(
        [gate_table(p["w_ih_f"], p["b_ih_f"], p["b_hh_f"]),
         gate_table(p["w_ih_b"], p["b_ih_b"], p["b_hh_b"])], axis=1
    ).astype(jnp.bfloat16)                                        # (V, 2*Gp)

    def hh(w_hh):                        # (H, Gp) transposed recurrent weight
        return jnp.pad(reorder(w_hh).T, ((0, 0), (0, Gp - 4 * H)))

    whh = jnp.stack([hh(p["w_hh_f"]), hh(p["w_hh_b"])]).astype(jnp.bfloat16)

    # ---------------- 1) fused embedding + input projection (row-tiled) ------
    ids = jnp.zeros((T, Bp), jnp.int32).at[:, :B].set(seq.T.astype(jnp.int32))
    ids = ids.reshape(T * Bp, 1)
    tm_e, n_e = _row_grid(T * Bp)
    ids = jnp.pad(ids, ((0, n_e - T * Bp), (0, 0)))

    gx_all = pl.pallas_call(
        _embed_gates_kernel,
        out_shape=jax.ShapeDtypeStruct((2, n_e, Gp), jnp.bfloat16),
        grid=(n_e // tm_e,),
        in_specs=[pl.BlockSpec((tm_e, 1), lambda i: (i, 0)),
                  pl.BlockSpec((V, 2 * Gp), lambda i: (0, 0))],
        out_specs=pl.BlockSpec((2, tm_e, Gp), lambda i: (0, i, 0)),
        compiler_params=pltpu.CompilerParams(dimension_semantics=("parallel",)),
    )(ids, gate_tab)
    gx = gx_all[:, :T * Bp].reshape(2, T, Bp, Gp)     # free reshape, no transpose

    # ---------------- 2) bidirectional LSTM: grid over direction -------------
    lens = jnp.zeros((Bp, 1), jnp.int32).at[:B, 0].set(seq_len.astype(jnp.int32))
    out_d, hn, cn = pl.pallas_call(
        _bilstm_dir_kernel,
        out_shape=(jax.ShapeDtypeStruct((2, T, Bp, H), jnp.float32),
                   jax.ShapeDtypeStruct((2, Bp, H), jnp.float32),
                   jax.ShapeDtypeStruct((2, Bp, H), jnp.float32)),
        grid=(2,),
        in_specs=[pl.BlockSpec((None, T, Bp, Gp), lambda d: (d, 0, 0, 0)),
                  pl.BlockSpec((Bp, 1), lambda d: (0, 0)),
                  pl.BlockSpec((None, H, Gp), lambda d: (d, 0, 0))],
        out_specs=(pl.BlockSpec((None, T, Bp, H), lambda d: (d, 0, 0, 0)),
                   pl.BlockSpec((None, Bp, H), lambda d: (d, 0, 0)),
                   pl.BlockSpec((None, Bp, H), lambda d: (d, 0, 0))),
        scratch_shapes=[pltpu.VMEM((Bp, H), jnp.float32),
                        pltpu.VMEM((Bp, H), jnp.float32)],
        compiler_params=pltpu.CompilerParams(
            dimension_semantics=("parallel",),
            vmem_limit_bytes=32 * 1024 * 1024),
    )(gx, lens, whh)

    # (2, T, Bp, H) -> (B, t_out, 2H): single transpose/slice/reshape for the
    # module's batch-first return layout (the kernel already wrote both
    # directions; no extra concat pass over padded activations).
    outputs = jnp.transpose(out_d, (2, 1, 0, 3))[:B, :t_out].reshape(B, t_out, 2 * H)
    h_n = hn[:, :B, :]
    c_n = cn[:, :B, :]

    # ---------------- 3) Linear transform (no bias), row-tiled ---------------
    n_rows = B * t_out
    flat = outputs.reshape(n_rows, 2 * H)
    tm_r, n_r = _row_grid(n_rows)
    flat_p = jnp.pad(flat, ((0, n_r - n_rows), (0, 0)))
    w_pad = jnp.pad(p["w_t"].T, ((0, 0), (0, Fp - 2 * H)))    # lane-dense output
    feature = pl.pallas_call(
        _matmul_rows_kernel,
        out_shape=jax.ShapeDtypeStruct((n_r, Fp), jnp.float32),
        grid=(n_r // tm_r,),
        in_specs=[pl.BlockSpec((tm_r, 2 * H), lambda i: (i, 0)),
                  pl.BlockSpec((2 * H, Fp), lambda i: (0, 0))],
        out_specs=pl.BlockSpec((tm_r, Fp), lambda i: (i, 0)),
        compiler_params=pltpu.CompilerParams(dimension_semantics=("parallel",)),
    )(flat_p, w_pad)[:n_rows, :2 * H]

    return outputs, feature, (h_n, c_n)


# ------------------------------ pure-JAX reference ---------------------------

def reference_forward(seq, seq_len, p):
    emb = p["emb"][seq]                                      # (B, T, E)
    B, T, _ = emb.shape
    H = p["w_hh_f"].shape[1]

    def run_dir(wih, whh, bih, bhh, reverse):
        h = jnp.zeros((B, H), jnp.float32)
        c = jnp.zeros((B, H), jnp.float32)
        outs = [None] * T
        ts = range(T - 1, -1, -1) if reverse else range(T)
        for t in ts:
            x_t = emb[:, t, :]
            gates = x_t @ wih.T + h @ whh.T + bih + bhh
            i = jax.nn.sigmoid(gates[:, :H])
            f = jax.nn.sigmoid(gates[:, H:2 * H])
            g = jnp.tanh(gates[:, 2 * H:3 * H])
            o = jax.nn.sigmoid(gates[:, 3 * H:])
            c_new = f * c + i * g
            h_new = o * jnp.tanh(c_new)
            valid = (seq_len > t)[:, None]
            h = jnp.where(valid, h_new, h)
            c = jnp.where(valid, c_new, c)
            outs[t] = jnp.where(valid, h_new, 0.0)
        return jnp.stack(outs, axis=1), h, c

    out_f, hf, cf = run_dir(p["w_ih_f"], p["w_hh_f"], p["b_ih_f"], p["b_hh_f"], False)
    out_b, hb, cb = run_dir(p["w_ih_b"], p["w_hh_b"], p["b_ih_b"], p["b_hh_b"], True)
    t_out = int(jnp.max(seq_len))
    outputs = jnp.concatenate([out_f, out_b], axis=-1)[:, :t_out]
    feature = outputs.reshape(-1, 2 * H) @ p["w_t"].T
    return outputs, feature, (jnp.stack([hf, hb]), jnp.stack([cf, cb]))


# ------------------------------ main ------------------------------------------

if __name__ == "__main__":
    VOCAB, EMB, HID = 50, 32, 32
    B, T = 2, 8

    key = jax.random.PRNGKey(0)
    k_seq, k_par = jax.random.split(key)
    seq = jax.random.randint(k_seq, (B, T), 0, VOCAB, dtype=jnp.int32)
    seq_len = jnp.array([8, 5], dtype=jnp.int32)
    params = init_params(k_par, VOCAB, EMB, HID)

    outputs, feature, (h_n, c_n) = encoder_forward(seq, seq_len, params)
    jax.block_until_ready((outputs, feature, h_n, c_n))

    r_out, r_feat, (r_hn, r_cn) = reference_forward(seq, seq_len, params)
    # Tolerance reflects bf16 gate inputs / bf16 recurrent MXU operands in the
    # Pallas path vs. a pure-f32 reference (state & accumulation stay f32).
    TOL = dict(rtol=3e-2, atol=3e-2)
    np.testing.assert_allclose(np.asarray(outputs), np.asarray(r_out), **TOL)
    np.testing.assert_allclose(np.asarray(feature), np.asarray(r_feat), **TOL)
    np.testing.assert_allclose(np.asarray(h_n), np.asarray(r_hn), **TOL)
    np.testing.assert_allclose(np.asarray(c_n), np.asarray(r_cn), **TOL)

    t_out = int(np.max(np.asarray(seq_len)))
    assert outputs.shape == (B, t_out, 2 * HID)
    assert feature.shape == (B * t_out, 2 * HID)
    assert h_n.shape == (2, B, HID) and c_n.shape == (2, B, HID)

    print("KERNEL_OK")
</pallas_src>

<mosaic_0001>
module attributes {stable_mosaic.version = 11 : i64} {
  func.func @_embed_gates_kernel(%arg0: i32, %arg1: memref<64x1xi32, #tpu.memory_space<vmem>>, %arg2: memref<50x256xbf16, #tpu.memory_space<vmem>>, %arg3: memref<2x64x128xbf16, #tpu.memory_space<vmem>>) attributes {dimension_semantics = [#tpu.dimension_semantics<parallel>], iteration_bounds = array<i64: 1>, scalar_prefetch = 0 : i64, scratch_operands = 0 : i64, tpu.core_type = #tpu.core_type<tc>, window_params = [{transform_indices = @transform_0, window_bounds = array<i64: 64, 1>}, {pipeline_mode = #tpu.pipeline_mode<synchronous>, transform_indices = @transform_1, window_bounds = array<i64: 50, 256>}, {transform_indices = @transform_2, window_bounds = array<i64: 2, 64, 128>}]} {
    %0 = tpu.iota {dimensions = array<i32: 1>} : vector<64x50xi32>
    %c0 = arith.constant 0 : index
    %c0_0 = arith.constant 0 : index
    %1 = vector.load %arg1[%c0, %c0_0] : memref<64x1xi32, #tpu.memory_space<vmem>>, vector<64x1xi32>
    %2 = vector.broadcast %1 : vector<64x1xi32> to vector<64x50xi32>
    %3 = arith.cmpi eq, %0, %2 : vector<64x50xi32>
    %4 = arith.extui %3 : vector<64x50xi1> to vector<64x50xi32>
    %5 = arith.sitofp %4 : vector<64x50xi32> to vector<64x50xf32>
    %6 = arith.truncf %5 : vector<64x50xf32> to vector<64x50xbf16>
    %c0_1 = arith.constant 0 : index
    %c0_2 = arith.constant 0 : index
    %7 = vector.load %arg2[%c0_1, %c0_2] : memref<50x256xbf16, #tpu.memory_space<vmem>>, vector<50x256xbf16>
    %cst = arith.constant dense<0.000000e+00> : vector<64x256xf32>
    %8 = tpu.matmul %6, %7, %cst {dimension_numbers = #tpu.dot_dimension_numbers<[1], [0], [0], [1], [0, 0, 1, 1], [], []>} : vector<64x50xbf16>, vector<50x256xbf16>, vector<64x256xf32> -> vector<64x256xf32>
    %9 = vector.extract_strided_slice %8 {offsets = [0, 0], sizes = [64, 128], strides = [1, 1]} : vector<64x256xf32> to vector<64x128xf32>
    %10 = arith.truncf %9 : vector<64x128xf32> to vector<64x128xbf16>
    %c0_3 = arith.constant 0 : index
    %c0_4 = arith.constant 0 : index
    %c0_5 = arith.constant 0 : index
    %11 = vector.load %arg3[%c0_3, %c0_4, %c0_5] : memref<2x64x128xbf16, #tpu.memory_space<vmem>>, vector<1x64x128xbf16>
    %12 = vector.shape_cast %11 : vector<1x64x128xbf16> to vector<64x128xbf16>
    %13 = vector.shape_cast %10 : vector<64x128xbf16> to vector<1x64x128xbf16>
    tpu.vector_store %arg3[%c0_3, %c0_4, %c0_5], %13 {strides = array<i32>} : memref<2x64x128xbf16, #tpu.memory_space<vmem>>, vector<1x64x128xbf16>,
    %14 = vector.extract_strided_slice %8 {offsets = [0, 128], sizes = [64, 128], strides = [1, 1]} : vector<64x256xf32> to vector<64x128xf32>
    %15 = arith.truncf %14 : vector<64x128xf32> to vector<64x128xbf16>
    %c1 = arith.constant 1 : index
    %c0_6 = arith.constant 0 : index
    %c0_7 = arith.constant 0 : index
    %16 = vector.load %arg3[%c1, %c0_6, %c0_7] : memref<2x64x128xbf16, #tpu.memory_space<vmem>>, vector<1x64x128xbf16>
    %17 = vector.shape_cast %16 : vector<1x64x128xbf16> to vector<64x128xbf16>
    %18 = vector.shape_cast %15 : vector<64x128xbf16> to vector<1x64x128xbf16>
    tpu.vector_store %arg3[%c1, %c0_6, %c0_7], %18 {strides = array<i32>} : memref<2x64x128xbf16, #tpu.memory_space<vmem>>, vector<1x64x128xbf16>,
    return
  }
  func.func @transform_0(%arg0: i32) -> (i32, i32) {
    %c0_i32 = arith.constant 0 : i32
    %c0_i32_0 = arith.constant 0 : i32
    return %arg0, %c0_i32 : i32, i32
  }
  func.func @transform_1(%arg0: i32) -> (i32, i32) {
    %c0_i32 = arith.constant 0 : i32
    %c0_i32_0 = arith.constant 0 : i32
    %c0_i32_1 = arith.constant 0 : i32
    return %c0_i32, %c0_i32_0 : i32, i32
  }
  func.func @transform_2(%arg0: i32) -> (i32, i32, i32) {
    %c0_i32 = arith.constant 0 : i32
    %c0_i32_0 = arith.constant 0 : i32
    %c0_i32_1 = arith.constant 0 : i32
    return %c0_i32, %arg0, %c0_i32_0 : i32, i32, i32
  }
}

</mosaic_0001>

<bundles_post_ra>
// kernel: tpu_custom_call.1
= control target key start
LH: loop header
LB: loop body
LE: loop exit
PB: predicated region body
PF: predicated region fallthrough
CT: control target
= control target key end

     0   :  { %v456_v2 = vmov 0   ;;  %s543_s0 = inlined_call_operand.vmem [shape: s32[64,1], index: 0, kind: input, shape index: {}]   ;;  %s544_s1 = inlined_call_operand.vmem [shape: bf16[50,256], index: 1, kind: input, shape index: {}]   ;;  %s545_s2 = inlined_call_operand.hbm [shape: bf16[2,64,128], index: 2, kind: output, shape index: {}]  }
   0x1   :  { %v19_v0 = vld [vmem:[%s543_s0 + $0x20] sm:$0xff]  ;;  %420 = vset.pattern.permute.xlu1 %v456_v2  ;;  %419 = vset.pattern.permute.xlu0 %v456_v2  ;;  %v20_v3 = vld [vmem:[%s543_s0 + $0x28] sm:$0xff]  ;;  %v424_v7 = vld [vmem:[%s544_s1 + $0x14] ss:$8 sps:$4 sm:$0xff]  }
   0x2   :  { %v15_v1 = vld [vmem:[%s543_s0] sm:$0xff]  ;;  %36 = vperm.xlu1 %420, %v19_v0   ;;  %v16_v4 = vld [vmem:[%s543_s0 + $0x8] sm:$0xff]  ;;  %169 = vmatprep.mubr.bf16.mxu0 %v456_v2  ;;  %v18_v8 = vld [vmem:[%s543_s0 + $0x18] sm:$0xff] }
   0x3   :  { %24 = vperm.xlu0 %419, %v15_v1   ;;  %v421_v5 = vld [vmem:[%s544_s1 + $0x4] ss:$8 sps:$4 sm:$0xff]   ;;  %v423_v6 = vld [vmem:[%s544_s1] ss:$8 sps:$4 sm:$0xff]   ;;  %189 = vmatprep.mubr.bf16.mxu1 %v456_v2  ;;  %v17_v9 = vld [vmem:[%s543_s0 + $0x10] sm:$0xff] }
   0x4   :  { %137 = vmatprep.subr.bf16.mxu0 %v421_v5  ;;  %406 = vmatprep.subr.bf16.mxu1 %v421_v5  ;;  %v426_v10 = vld [vmem:[%s544_s1 + $0x10] ss:$8 sps:$4 sm:$0xff]  }
   0x5   :  { %138 = vmatpush1.bf16.msra.mxu0 %v423_v6  ;;  %410 = vmatpush1.bf16.msra.mxu1 %v423_v6 }
   0x6   :  { %39 = vperm.xlu1 %420, %v20_v3  }
   0x7   :  { %27 = vperm.xlu0 %419, %v16_v4  }
   0x8   :  { %7 = vsyncpa [#allocation3], 0  ;;  %139 = vmatprep.subr.bf16.mxu0 %v424_v7  ;;  %407 = vmatprep.subr.bf16.mxu1 %v424_v7  ;;  %v427_v11 = vld [vmem:[%s544_s1 + $0x24] ss:$8 sps:$4 sm:$0xff]   ;;  %v81_v12 = vld [vmem:[%s544_s1 + $0x30] sm:$0x11]  ;;  %v13_v19 = vlaneseq }
   0x9   :  { %v22_v13 = vld [vmem:[%s543_s0 + $0x38] sm:$0xff]  ;;  %v21_v14 = vld [vmem:[%s543_s0 + $0x30] sm:$0xff]  ;;  %140 = vmatpush1.bf16.msra.mxu0 %v426_v10  ;;  %411 = vmatpush1.bf16.msra.mxu1 %v426_v10  ;;  %v429_v15 = vld [vmem:[%s544_s1 + $0x20] ss:$8 sps:$4 sm:$0xff]   ;;  %v322_v16 = vcombine.high %v81_v12, %v81_v12  ;;  %v321_v17 = vcombine.low %v81_v12, %v81_v12  ;;  %vm130_vm0 = vcmask 1040384   ;;  %vm117_vm5 = vcmask 408576  }
   0xa   :  { %33 = vperm.xlu1 %420, %v18_v8   ;;  %141 = vmatprep.subr.bf16.mxu0 %v427_v11  ;;  %v14_v20 = vand.u32 127, %v13_v19  ;;  %v457_v25 = vmov 0.0   ;;  %s458_s0 = smov [#allocation2]  }
   0xb   :  { %30 = vperm.xlu0 %419, %v17_v9   ;;  %408 = vmatprep.subr.bf16.mxu1 %v427_v11  ;;  %v132_v18 = vsel %vm130_vm0, %v321_v17, 0  ;;  %s296_s1 = sshll.u32 %s458_s0, 4  ;;  %s297_s1 = int_to_ptr.vmem [resolvable:$true] %s296_s1 }
   0xc   :  { %s432_s11 = scalar_lea.vmem %s297_s1, 1024  ;;  %p437_p1 = scmp.lt.s32.totalorder %s297_s1, %s297_s1 }
   0xd   :  { %142 = vmatpush1.bf16.msra.mxu0 %v429_v15  ;;  %412 = vmatpush1.bf16.msra.mxu1 %v429_v15  ;;  %p433_p0 = scmp.ne.s32.totalorder %s297_s1, %s432_s11  ;;  %p438_p2 = scmp.lt.s32.totalorder %s432_s11, %s432_s11 }
   0xe   :  { %45 = vperm.xlu1 %420, %v22_v13   ;;  %323 = vmatprep.subr.msk.bf16.mxu0 %vm130_vm0, %v322_v16 }
   0xf   :  { %42 = vperm.xlu0 %419, %v21_v14   ;;  %409 = vmatprep.subr.msk.bf16.mxu1 %vm130_vm0, %v322_v16  ;;  %p439_p3 = por %p438_p2, %p437_p1 }
  0x11   :  { %144 = vmatpush1.bf16.msra.mxu0 %v132_v18  ;;  %413 = vmatpush1.bf16.msra.mxu1 %v132_v18  ;;  %p440_p4 = pnand %p439_p3, %p433_p0 }
  0x81   :  { %v37_v21 = vpop.permute.xlu1 %36 }
  0x82   :  { %v25_v22 = vpop.permute.xlu0 %24  ;;  %vm51_vm1 = vcmp.eq.s32.totalorder %v14_v20, %v37_v21 }
  0x83   :  { %vm47_vm2 = vcmp.eq.s32.totalorder %v14_v20, %v25_v22  ;;  %v311_v26 = vsel %vm51_vm1, 1.0, %v457_v25 }
  0x84   :  { %v307_v27 = vsel %vm47_vm2, 1.0, %v457_v25 }
  0x85   :  { %v40_v23 = vpop.permute.xlu1 %39 }
  0x86   :  { %v28_v24 = vpop.permute.xlu0 %27  ;;  %vm52_vm3 = vcmp.eq.s32.totalorder %v14_v20, %v40_v23 }
  0x87   :  { %vm48_vm4 = vcmp.eq.s32.totalorder %v14_v20, %v28_v24  ;;  %v312_v28 = vsel %vm52_vm3, 1.0, %v457_v25 }
  0x88   :  { %v308_v29 = vsel %vm48_vm4, 1.0, %v457_v25  ;;  %v73_v30 = vpack.c.bf16 %v312_v28, %v311_v26 }
  0x89   :  { %v71_v31 = vpack.c.bf16 %v308_v29, %v307_v27  ;;  %v34_v32 = vpop.permute.xlu1 %33 }
  0x8a   :  { %v31_v33 = vpop.permute.xlu0 %30  ;;  %vm50_vm6 = vcmp.eq.s32.totalorder %v14_v20, %v34_v32  ;;  %326 = vmatmul.mubr.msk.bf16.vlgmr.msra.gmra.mrb[0].mxu1 %vm117_vm5, %v73_v30 }
  0x8b   :  { %vm49_vm7 = vcmp.eq.s32.totalorder %v14_v20, %v31_v33  ;;  %324 = vmatmul.mubr.msk.bf16.vlgmr.msra.gmra.mrb[0].mxu0 %vm117_vm5, %v71_v31  ;;  %199 = vmatprep.mubr.bf16.mxu1 %v456_v2  ;;  %v310_v34 = vsel %vm50_vm6, 1.0, %v457_v25 }
  0x8c   :  { %179 = vmatprep.mubr.bf16.mxu0 %v456_v2  ;;  %v309_v35 = vsel %vm49_vm7, 1.0, %v457_v25 }
  0x8d   :  { %v46_v36 = vpop.permute.xlu1 %45  ;;  %v72_v40 = vpack.c.bf16 %v310_v34, %v309_v35 }
  0x8e   :  { %v43_v37 = vpop.permute.xlu0 %42  ;;  %vm54_vm8 = vcmp.eq.s32.totalorder %v14_v20, %v46_v36 }
  0x8f   :  { %vm53_vm9 = vcmp.eq.s32.totalorder %v14_v20, %v43_v37  ;;  %v314_v38 = vsel %vm54_vm8, 1.0, %v457_v25 }
  0x90   :  { %v313_v39 = vsel %vm53_vm9, 1.0, %v457_v25 }
  0x91   :  { %v74_v41 = vpack.c.bf16 %v314_v38, %v313_v39 }
  0x93   :  { %325 = vmatmul.mubr.msk.bf16.gmra.mrb[4].mxu0 %vm117_vm5, %v72_v40  ;;  %327 = vmatmul.mubr.msk.bf16.gmra.mrb[4].mxu1 %vm117_vm5, %v74_v41 }
 0x15d   :  { %v191_v43 = vpop.f32.mrb[0].mxu1 }
 0x15e   :  { %v171_v42 = vpop.f32.mrb[0].mxu0  ;;  %v193_v45 = vpop.f32.mrb[1].mxu1 }
 0x15f   :  { %v173_v44 = vpop.f32.mrb[1].mxu0  ;;  %v195_v47 = vpop.f32.mrb[2].mxu1 }
 0x160   :  { %v175_v46 = vpop.f32.mrb[2].mxu0  ;;  %v373_v49 = vpack.c.bf16 %v195_v47, %v191_v43  ;;  %v197_v51 = vpop.f32.mrb[3].mxu1 }
 0x161   :  { %v363_v48 = vpack.c.bf16 %v175_v46, %v171_v42  ;;  %v177_v50 = vpop.f32.mrb[3].mxu0  ;;  %v393_v53 = vpack.c.bf16 %v197_v51, %v193_v45 }
 0x162   :  { %v383_v52 = vpack.c.bf16 %v177_v50, %v173_v44  ;;  %401 = vst [vmem:[#allocation2 + $0x10] sm:$0xff] %v373_v49  }
 0x163   :  { %364 = vst [vmem:[#allocation2] sm:$0xff] %v363_v48   ;;  %404 = vst [vmem:[#allocation2 + $0x30] sm:$0xff] %v393_v53  }
 0x164   :  { %384 = vst [vmem:[#allocation2 + $0x20] sm:$0xff] %v383_v52  }
 0x166   :  { %v181_v54 = vpop.f32.mrb[4].mxu0  ;;  %v201_v55 = vpop.f32.mrb[4].mxu1 }
 0x167   :  { %v183_v56 = vpop.f32.mrb[5].mxu0  ;;  %v203_v57 = vpop.f32.mrb[5].mxu1 }
 0x168   :  { %v185_v58 = vpop.f32.mrb[6].mxu0  ;;  %v205_v59 = vpop.f32.mrb[6].mxu1 }
 0x169   :  { %v368_v60 = vpack.c.bf16 %v185_v58, %v181_v54  ;;  %v378_v61 = vpack.c.bf16 %v205_v59, %v201_v55  ;;  %v187_v62 = vpop.f32.mrb[7].mxu0  ;;  %v207_v63 = vpop.f32.mrb[7].mxu1 }
 0x16a   :  { %v388_v0 = vpack.c.bf16 %v187_v62, %v183_v56  ;;  %v398_v1 = vpack.c.bf16 %v207_v63, %v203_v57 }
 0x16b   :  { %400 = vst [vmem:[#allocation2 + $0x8] sm:$0xff] %v368_v60   ;;  %402 = vst [vmem:[#allocation2 + $0x18] sm:$0xff] %v378_v61  }
 0x16c   :  { %403 = vst [vmem:[#allocation2 + $0x28] sm:$0xff] %v388_v0   ;;  %405 = vst [vmem:[#allocation2 + $0x38] sm:$0xff] %v398_v1  }
 0x16d   :  { %443 = shalt.err (!%p440_p4)
}
 0x16e   :  { %s444_s14 = scalar_lea.hbm %s545_s2, 1024 }
 0x16f   :  { %p445_p5 = scmp.ne.s32.totalorder %s545_s2, %s444_s14  ;;  %p448_p6 = scmp.lt.u32.totalorder %s444_s14, %s545_s2 }
 0x171   :  { %p450_p7 = pnand %p448_p6, %p445_p5 }
 0x173   :  { %453 = shalt.err (!%p450_p7)
}
 0x174   :  { %s459_s19 = smov 64   ;;  %s460_s20 = smov 4  }
 0x175   :  { %302 = dma.vmem_to_hbm [thread:$0]  %s297_s1, 1024, %s545_s2, [#allocation3], %s459_s19, %s459_s19, %s460_s20  }
 0x176   :  { %454 = dma.done.wait [#allocation3], 1024  }
 0x177   :  { %455 = vsyncadd [#allocation3], 4294966272 }
 0x178   :  { %306 = vsyncpa [#allocation3], 1 }

</bundles_post_ra>
